<compile_context>
chip_gen: v7x
topology: tpu7x:2x2x1
jax: 0.10.0
libtpu: 0.0.40
codegen_flags: <defaults>
</compile_context>

<pallas_src>
import functools

import jax
import jax.numpy as jnp
from jax.experimental import pallas as pl
from jax.experimental.pallas import tpu as pltpu

LANE = 128
FUSED_MAX_NODES = 1024  # A_hat <= 1024x1024 bf16 (2 MiB) -> single fused kernel


def _log_softmax_masked(z, n_valid_cols):
    """Row-wise log_softmax over the first n_valid_cols lanes (padding masked)."""
    col = jax.lax.broadcasted_iota(jnp.int32, z.shape, 1)
    z = jnp.where(col < n_valid_cols, z, -1e30)
    m = jnp.max(z, axis=1, keepdims=True)
    lse = jnp.log(jnp.sum(jnp.exp(z - m), axis=1, keepdims=True)) + m
    return z - lse


def _gnn_fused_kernel(a_ref, x_ref, w1_ref, b1_ref, w2_ref, b2_ref, w3_ref,
                      b3_ref, o_ref, *, n_valid_cols):
    """Whole network in one kernel (small graphs, everything VMEM resident)."""
    ax = jnp.dot(a_ref[...], x_ref[...], preferred_element_type=jnp.float32)
    h1 = jnp.dot(ax.astype(jnp.bfloat16), w1_ref[...],
                 preferred_element_type=jnp.float32)
    h1 = jnp.maximum(h1 + b1_ref[...], 0.0)

    ah = jnp.dot(a_ref[...], h1.astype(jnp.bfloat16),
                 preferred_element_type=jnp.float32)
    h2 = jnp.dot(ah.astype(jnp.bfloat16), w2_ref[...],
                 preferred_element_type=jnp.float32)
    h2 = jnp.maximum(h2 + b2_ref[...], 0.0)

    z = jnp.dot(h2.astype(jnp.bfloat16), w3_ref[...],
                preferred_element_type=jnp.float32) + b3_ref[...]
    o_ref[...] = _log_softmax_masked(z, n_valid_cols)


def _gcn1_kernel(a_ref, x_ref, w1_ref, b1_ref, h1_ref):
    """H1 = relu((A_tile @ X) @ W1 + b1), bf16 MXU operands, f32 accum."""
    ax = jnp.dot(a_ref[...], x_ref[...], preferred_element_type=jnp.float32)
    h = jnp.dot(ax.astype(jnp.bfloat16), w1_ref[...],
                preferred_element_type=jnp.float32)
    h = jnp.maximum(h + b1_ref[...], 0.0)
    h1_ref[...] = h.astype(h1_ref.dtype)


def _gcn2_head_kernel(a_ref, h1_ref, w2_ref, b2_ref, w3_ref, b3_ref, o_ref,
                      *, n_valid_cols):
    """out = log_softmax(relu((A_tile @ H1) @ W2 + b2) @ W3 + b3)."""
    ah = jnp.dot(a_ref[...], h1_ref[...], preferred_element_type=jnp.float32)
    h = jnp.dot(ah.astype(jnp.bfloat16), w2_ref[...],
                preferred_element_type=jnp.float32)
    h = jnp.maximum(h + b2_ref[...], 0.0)
    z = jnp.dot(h.astype(jnp.bfloat16), w3_ref[...],
                preferred_element_type=jnp.float32) + b3_ref[...]
    o_ref[...] = _log_softmax_masked(z, n_valid_cols)


def build_norm_adj(edge_index, num_nodes):
    """Dense A_hat = D^-1/2 (A + I) D^-1/2 from edge_index [2, E] (src, dst).

    Uses scatter-ADD so duplicate (src, dst) edges accumulate, matching the
    sum-aggregation of the reference message passing.
    """
    src = edge_index[0]
    dst = edge_index[1]
    a = jnp.zeros((num_nodes, num_nodes), jnp.float32)
    a = a.at[dst, src].add(1.0)                       # message flows src -> dst
    a = a + jnp.eye(num_nodes, dtype=jnp.float32)     # self-loops
    deg = jnp.sum(a, axis=1)
    d_inv_sqrt = jnp.where(deg > 0, 1.0 / jnp.sqrt(deg), 0.0)
    return d_inv_sqrt[:, None] * a * d_inv_sqrt[None, :]


def _round_up(x, m):
    return ((x + m - 1) // m) * m


def _pad2(x, rows, cols):
    return jnp.pad(x, ((0, rows - x.shape[0]), (0, cols - x.shape[1])))


def gnn_forward(x, edge_index, params, *, row_tile=128):
    w1, b1, w2, b2, w3, b3 = params
    n, cin = x.shape
    hid = w1.shape[1]
    cout = w3.shape[1]

    # Lane-dense padding: 128 on every channel axis AND on the node axis of
    # A_hat; node rows additionally padded to a multiple of the row tile.
    n_lane = _round_up(n, LANE)
    tm = min(row_tile, n_lane)
    n_pad = _round_up(n_lane, tm)
    cin_p = _round_up(cin, LANE)
    hid_p = _round_up(hid, LANE)
    cout_p = _round_up(cout, LANE)

    a_hat = build_norm_adj(edge_index, n)
    a_p = _pad2(a_hat, n_pad, n_pad).astype(jnp.bfloat16)
    x_p = _pad2(x.astype(jnp.float32), n_pad, cin_p).astype(jnp.bfloat16)
    w1_p = _pad2(w1, cin_p, hid_p).astype(jnp.bfloat16)
    w2_p = _pad2(w2, hid_p, cout_p).astype(jnp.bfloat16)
    w3_p = _pad2(w3, cout_p, cout_p).astype(jnp.bfloat16)
    b1_p = jnp.pad(b1, (0, hid_p - hid)).reshape(1, -1).astype(jnp.float32)
    b2_p = jnp.pad(b2, (0, cout_p - cout)).reshape(1, -1).astype(jnp.float32)
    b3_p = jnp.pad(b3, (0, cout_p - cout)).reshape(1, -1).astype(jnp.float32)

    def full(r, c):
        return pl.BlockSpec((r, c), lambda i: (0, 0))

    def rows(c):
        return pl.BlockSpec((tm, c), lambda i: (i, 0))

    # ---------------- Fused single-kernel path (small graphs) ----------------
    if n_pad <= FUSED_MAX_NODES:
        out_p = pl.pallas_call(
            functools.partial(_gnn_fused_kernel, n_valid_cols=cout),
            out_shape=jax.ShapeDtypeStruct((n_pad, cout_p), jnp.float32),
            grid=(1,),
            in_specs=[full(n_pad, n_pad), full(n_pad, cin_p),
                      full(cin_p, hid_p), full(1, hid_p),
                      full(hid_p, cout_p), full(1, cout_p),
                      full(cout_p, cout_p), full(1, cout_p)],
            out_specs=full(n_pad, cout_p),
            compiler_params=pltpu.CompilerParams(
                dimension_semantics=("arbitrary",),
                vmem_limit_bytes=32 * 1024 * 1024),
            cost_estimate=pl.CostEstimate(
                flops=(2 * n_pad * n_pad * (cin_p + hid_p)
                       + 2 * n_pad * (cin_p * hid_p + hid_p * cout_p
                                      + cout_p * cout_p)),
                transcendentals=n_pad * cout_p,
                bytes_accessed=2 * (n_pad * n_pad + n_pad * cin_p
                                    + cin_p * hid_p + hid_p * cout_p
                                    + cout_p * cout_p) + 4 * n_pad * cout_p),
        )(a_p, x_p, w1_p, b1_p, w2_p, b2_p, w3_p, b3_p)
        return out_p[:n, :cout]

    # ---------------- Two-phase row-tiled path (larger graphs) ---------------
    grid = (n_pad // tm,)
    cparams = pltpu.CompilerParams(
        dimension_semantics=("parallel",),        # rows independent -> 2x on v7x
        vmem_limit_bytes=32 * 1024 * 1024,
    )

    # Kernel 1: H1 = relu(A_hat @ X @ W1 + b1), row-tiled over A_hat.
    h1 = pl.pallas_call(
        _gcn1_kernel,
        out_shape=jax.ShapeDtypeStruct((n_pad, hid_p), jnp.bfloat16),
        grid=grid,
        in_specs=[rows(n_pad), full(n_pad, cin_p), full(cin_p, hid_p),
                  full(1, hid_p)],
        out_specs=rows(hid_p),
        compiler_params=cparams,
        cost_estimate=pl.CostEstimate(
            flops=2 * n_pad * n_pad * cin_p + 2 * n_pad * cin_p * hid_p,
            transcendentals=0,
            bytes_accessed=2 * (n_pad * n_pad + n_pad * cin_p
                                + cin_p * hid_p + n_pad * hid_p)),
    )(a_p, x_p, w1_p, b1_p)

    # Kernel 2: GCN layer 2 + Linear + log_softmax, row-tiled over A_hat.
    out_p = pl.pallas_call(
        functools.partial(_gcn2_head_kernel, n_valid_cols=cout),
        out_shape=jax.ShapeDtypeStruct((n_pad, cout_p), jnp.float32),
        grid=grid,
        in_specs=[rows(n_pad), full(n_pad, hid_p), full(hid_p, cout_p),
                  full(1, cout_p), full(cout_p, cout_p), full(1, cout_p)],
        out_specs=rows(cout_p),
        compiler_params=cparams,
        cost_estimate=pl.CostEstimate(
            flops=(2 * n_pad * n_pad * hid_p + 2 * n_pad * hid_p * cout_p
                   + 2 * n_pad * cout_p * cout_p),
            transcendentals=n_pad * cout_p,
            bytes_accessed=2 * (n_pad * n_pad + n_pad * hid_p
                                + hid_p * cout_p) + 4 * n_pad * cout_p),
    )(a_p, h1, w2_p, b2_p, w3_p, b3_p)

    return out_p[:n, :cout]


def init_params(key, in_channels, hidden_channels, out_channels):
    k1, k2, k3, k4, k5, k6 = jax.random.split(key, 6)
    w1 = jax.random.normal(k1, (in_channels, hidden_channels), jnp.float32) * 0.1
    b1 = jax.random.normal(k2, (hidden_channels,), jnp.float32) * 0.01
    w2 = jax.random.normal(k3, (hidden_channels, out_channels), jnp.float32) * 0.1
    b2 = jax.random.normal(k4, (out_channels,), jnp.float32) * 0.01
    w3 = jax.random.normal(k5, (out_channels, out_channels), jnp.float32) * 0.1
    b3 = jax.random.normal(k6, (out_channels,), jnp.float32) * 0.01
    return (w1, b1, w2, b2, w3, b3)


if __name__ == "__main__":
    key = jax.random.PRNGKey(0)
    k_x, k_e, k_p = jax.random.split(key, 3)

    num_nodes = 16
    in_channels = 4
    hidden_channels = 32
    out_channels = 8
    num_edges = 40

    x = jax.random.normal(k_x, (num_nodes, in_channels), jnp.float32)
    edge_index = jax.random.randint(k_e, (2, num_edges), 0, num_nodes,
                                    dtype=jnp.int32)
    params = init_params(k_p, in_channels, hidden_channels, out_channels)

    out = gnn_forward(x, edge_index, params)
    jax.block_until_ready(out)

    assert out.shape == (num_nodes, out_channels)
    # rows of log_softmax should exp-sum to 1 (bf16 matmuls -> loose tol)
    assert jnp.allclose(jnp.sum(jnp.exp(out), axis=1), 1.0, atol=1e-2)
    print("KERNEL_OK")
</pallas_src>

<mosaic_0001>
module attributes {stable_mosaic.version = 11 : i64} {
  func.func @_gnn_fused_kernel(%arg0: i32, %arg1: memref<128x128xbf16, #tpu.memory_space<vmem>>, %arg2: memref<128x128xbf16, #tpu.memory_space<vmem>>, %arg3: memref<128x128xbf16, #tpu.memory_space<vmem>>, %arg4: memref<1x128xf32, #tpu.memory_space<vmem>>, %arg5: memref<128x128xbf16, #tpu.memory_space<vmem>>, %arg6: memref<1x128xf32, #tpu.memory_space<vmem>>, %arg7: memref<128x128xbf16, #tpu.memory_space<vmem>>, %arg8: memref<1x128xf32, #tpu.memory_space<vmem>>, %arg9: memref<128x128xf32, #tpu.memory_space<vmem>>) attributes {dimension_semantics = [#tpu.dimension_semantics<arbitrary>], iteration_bounds = array<i64: 1>, scalar_prefetch = 0 : i64, scratch_operands = 0 : i64, tpu.core_type = #tpu.core_type<tc>, window_params = [{pipeline_mode = #tpu.pipeline_mode<synchronous>, transform_indices = @transform_0, window_bounds = array<i64: 128, 128>}, {pipeline_mode = #tpu.pipeline_mode<synchronous>, transform_indices = @transform_1, window_bounds = array<i64: 128, 128>}, {pipeline_mode = #tpu.pipeline_mode<synchronous>, transform_indices = @transform_2, window_bounds = array<i64: 128, 128>}, {pipeline_mode = #tpu.pipeline_mode<synchronous>, transform_indices = @transform_3, window_bounds = array<i64: 1, 128>}, {pipeline_mode = #tpu.pipeline_mode<synchronous>, transform_indices = @transform_4, window_bounds = array<i64: 128, 128>}, {pipeline_mode = #tpu.pipeline_mode<synchronous>, transform_indices = @transform_5, window_bounds = array<i64: 1, 128>}, {pipeline_mode = #tpu.pipeline_mode<synchronous>, transform_indices = @transform_6, window_bounds = array<i64: 128, 128>}, {pipeline_mode = #tpu.pipeline_mode<synchronous>, transform_indices = @transform_7, window_bounds = array<i64: 1, 128>}, {pipeline_mode = #tpu.pipeline_mode<synchronous>, transform_indices = @transform_8, window_bounds = array<i64: 128, 128>}]} {
    %c0 = arith.constant 0 : index
    %c0_0 = arith.constant 0 : index
    %0 = vector.load %arg1[%c0, %c0_0] : memref<128x128xbf16, #tpu.memory_space<vmem>>, vector<128x128xbf16>
    %c0_1 = arith.constant 0 : index
    %c0_2 = arith.constant 0 : index
    %1 = vector.load %arg2[%c0_1, %c0_2] : memref<128x128xbf16, #tpu.memory_space<vmem>>, vector<128x128xbf16>
    %cst = arith.constant dense<0.000000e+00> : vector<128x128xf32>
    %2 = tpu.matmul %0, %1, %cst {dimension_numbers = #tpu.dot_dimension_numbers<[1], [0], [0], [1], [0, 0, 1, 1], [], []>} : vector<128x128xbf16>, vector<128x128xbf16>, vector<128x128xf32> -> vector<128x128xf32>
    %3 = arith.truncf %2 : vector<128x128xf32> to vector<128x128xbf16>
    %c0_3 = arith.constant 0 : index
    %c0_4 = arith.constant 0 : index
    %4 = vector.load %arg3[%c0_3, %c0_4] : memref<128x128xbf16, #tpu.memory_space<vmem>>, vector<128x128xbf16>
    %cst_5 = arith.constant dense<0.000000e+00> : vector<128x128xf32>
    %5 = tpu.matmul %3, %4, %cst_5 {dimension_numbers = #tpu.dot_dimension_numbers<[1], [0], [0], [1], [0, 0, 1, 1], [], []>} : vector<128x128xbf16>, vector<128x128xbf16>, vector<128x128xf32> -> vector<128x128xf32>
    %c0_6 = arith.constant 0 : index
    %c0_7 = arith.constant 0 : index
    %6 = vector.load %arg4[%c0_6, %c0_7] : memref<1x128xf32, #tpu.memory_space<vmem>>, vector<1x128xf32>
    %7 = vector.broadcast %6 : vector<1x128xf32> to vector<128x128xf32>
    %8 = arith.addf %5, %7 : vector<128x128xf32>
    %cst_8 = arith.constant 0.000000e+00 : f32
    %9 = vector.broadcast %cst_8 : f32 to vector<128x128xf32>
    %10 = arith.maximumf %8, %9 : vector<128x128xf32>
    %c0_9 = arith.constant 0 : index
    %c0_10 = arith.constant 0 : index
    %11 = vector.load %arg1[%c0_9, %c0_10] : memref<128x128xbf16, #tpu.memory_space<vmem>>, vector<128x128xbf16>
    %12 = arith.truncf %10 : vector<128x128xf32> to vector<128x128xbf16>
    %cst_11 = arith.constant dense<0.000000e+00> : vector<128x128xf32>
    %13 = tpu.matmul %11, %12, %cst_11 {dimension_numbers = #tpu.dot_dimension_numbers<[1], [0], [0], [1], [0, 0, 1, 1], [], []>} : vector<128x128xbf16>, vector<128x128xbf16>, vector<128x128xf32> -> vector<128x128xf32>
    %14 = arith.truncf %13 : vector<128x128xf32> to vector<128x128xbf16>
    %c0_12 = arith.constant 0 : index
    %c0_13 = arith.constant 0 : index
    %15 = vector.load %arg5[%c0_12, %c0_13] : memref<128x128xbf16, #tpu.memory_space<vmem>>, vector<128x128xbf16>
    %cst_14 = arith.constant dense<0.000000e+00> : vector<128x128xf32>
    %16 = tpu.matmul %14, %15, %cst_14 {dimension_numbers = #tpu.dot_dimension_numbers<[1], [0], [0], [1], [0, 0, 1, 1], [], []>} : vector<128x128xbf16>, vector<128x128xbf16>, vector<128x128xf32> -> vector<128x128xf32>
    %c0_15 = arith.constant 0 : index
    %c0_16 = arith.constant 0 : index
    %17 = vector.load %arg6[%c0_15, %c0_16] : memref<1x128xf32, #tpu.memory_space<vmem>>, vector<1x128xf32>
    %18 = vector.broadcast %17 : vector<1x128xf32> to vector<128x128xf32>
    %19 = arith.addf %16, %18 : vector<128x128xf32>
    %cst_17 = arith.constant 0.000000e+00 : f32
    %20 = vector.broadcast %cst_17 : f32 to vector<128x128xf32>
    %21 = arith.maximumf %19, %20 : vector<128x128xf32>
    %22 = arith.truncf %21 : vector<128x128xf32> to vector<128x128xbf16>
    %c0_18 = arith.constant 0 : index
    %c0_19 = arith.constant 0 : index
    %23 = vector.load %arg7[%c0_18, %c0_19] : memref<128x128xbf16, #tpu.memory_space<vmem>>, vector<128x128xbf16>
    %cst_20 = arith.constant dense<0.000000e+00> : vector<128x128xf32>
    %24 = tpu.matmul %22, %23, %cst_20 {dimension_numbers = #tpu.dot_dimension_numbers<[1], [0], [0], [1], [0, 0, 1, 1], [], []>} : vector<128x128xbf16>, vector<128x128xbf16>, vector<128x128xf32> -> vector<128x128xf32>
    %c0_21 = arith.constant 0 : index
    %c0_22 = arith.constant 0 : index
    %25 = vector.load %arg8[%c0_21, %c0_22] : memref<1x128xf32, #tpu.memory_space<vmem>>, vector<1x128xf32>
    %26 = vector.broadcast %25 : vector<1x128xf32> to vector<128x128xf32>
    %27 = arith.addf %24, %26 : vector<128x128xf32>
    %28 = tpu.iota {dimensions = array<i32: 1>} : vector<128x128xi32>
    %c8_i32 = arith.constant 8 : i32
    %29 = vector.broadcast %c8_i32 : i32 to vector<128x128xi32>
    %30 = arith.cmpi slt, %28, %29 : vector<128x128xi32>
    %cst_23 = arith.constant -1.000000e+30 : f32
    %31 = vector.broadcast %cst_23 : f32 to vector<128x128xf32>
    %32 = arith.select %30, %27, %31 : vector<128x128xi1>, vector<128x128xf32>
    %cst_24 = arith.constant dense<0xFF800000> : vector<128xf32>
    %33 = vector.multi_reduction <maximumf>, %32, %cst_24 [1] : vector<128x128xf32> to vector<128xf32>
    %34 = vector.shape_cast %33 : vector<128xf32> to vector<128x1xf32>
    %35 = vector.broadcast %34 : vector<128x1xf32> to vector<128x128xf32>
    %36 = arith.subf %32, %35 : vector<128x128xf32>
    %37 = math.exp %36 : vector<128x128xf32>
    %cst_25 = arith.constant dense<0.000000e+00> : vector<128xf32>
    %38 = vector.multi_reduction <add>, %37, %cst_25 [1] : vector<128x128xf32> to vector<128xf32>
    %39 = vector.shape_cast %38 : vector<128xf32> to vector<128x1xf32>
    %40 = math.log %39 : vector<128x1xf32>
    %41 = arith.addf %40, %34 : vector<128x1xf32>
    %42 = vector.broadcast %41 : vector<128x1xf32> to vector<128x128xf32>
    %43 = arith.subf %32, %42 : vector<128x128xf32>
    %c0_26 = arith.constant 0 : index
    %c0_27 = arith.constant 0 : index
    %44 = vector.load %arg9[%c0_26, %c0_27] : memref<128x128xf32, #tpu.memory_space<vmem>>, vector<128x128xf32>
    tpu.vector_store %arg9[%c0_26, %c0_27], %43 {strides = array<i32>} : memref<128x128xf32, #tpu.memory_space<vmem>>, vector<128x128xf32>,
    return
  }
  func.func @transform_0(%arg0: i32) -> (i32, i32) {
    %c0_i32 = arith.constant 0 : i32
    %c0_i32_0 = arith.constant 0 : i32
    %c0_i32_1 = arith.constant 0 : i32
    return %c0_i32, %c0_i32_0 : i32, i32
  }
  func.func @transform_1(%arg0: i32) -> (i32, i32) {
    %c0_i32 = arith.constant 0 : i32
    %c0_i32_0 = arith.constant 0 : i32
    %c0_i32_1 = arith.constant 0 : i32
    return %c0_i32, %c0_i32_0 : i32, i32
  }
  func.func @transform_2(%arg0: i32) -> (i32, i32) {
    %c0_i32 = arith.constant 0 : i32
    %c0_i32_0 = arith.constant 0 : i32
    %c0_i32_1 = arith.constant 0 : i32
    return %c0_i32, %c0_i32_0 : i32, i32
  }
  func.func @transform_3(%arg0: i32) -> (i32, i32) {
    %c0_i32 = arith.constant 0 : i32
    %c0_i32_0 = arith.constant 0 : i32
    %c0_i32_1 = arith.constant 0 : i32
    return %c0_i32, %c0_i32_0 : i32, i32
  }
  func.func @transform_4(%arg0: i32) -> (i32, i32) {
    %c0_i32 = arith.constant 0 : i32
    %c0_i32_0 = arith.constant 0 : i32
    %c0_i32_1 = arith.constant 0 : i32
    return %c0_i32, %c0_i32_0 : i32, i32
  }
  func.func @transform_5(%arg0: i32) -> (i32, i32) {
    %c0_i32 = arith.constant 0 : i32
    %c0_i32_0 = arith.constant 0 : i32
    %c0_i32_1 = arith.constant 0 : i32
    return %c0_i32, %c0_i32_0 : i32, i32
  }
  func.func @transform_6(%arg0: i32) -> (i32, i32) {
    %c0_i32 = arith.constant 0 : i32
    %c0_i32_0 = arith.constant 0 : i32
    %c0_i32_1 = arith.constant 0 : i32
    return %c0_i32, %c0_i32_0 : i32, i32
  }
  func.func @transform_7(%arg0: i32) -> (i32, i32) {
    %c0_i32 = arith.constant 0 : i32
    %c0_i32_0 = arith.constant 0 : i32
    %c0_i32_1 = arith.constant 0 : i32
    return %c0_i32, %c0_i32_0 : i32, i32
  }
  func.func @transform_8(%arg0: i32) -> (i32, i32) {
    %c0_i32 = arith.constant 0 : i32
    %c0_i32_0 = arith.constant 0 : i32
    %c0_i32_1 = arith.constant 0 : i32
    return %c0_i32, %c0_i32_0 : i32, i32
  }
}

</mosaic_0001>

<bundles_post_ra>
// kernel: tpu_custom_call.1
= control target key start
LH: loop header
LB: loop body
LE: loop exit
PB: predicated region body
PF: predicated region fallthrough
CT: control target
= control target key end

     0   :  { %13 = vsyncpa [#allocation3], 0  ;;  %s2144_s0 = inlined_call_operand.hbm [shape: bf16[128,128], index: 0, kind: input, shape index: {}]   ;;  %s2145_s1 = inlined_call_operand.hbm [shape: bf16[128,128], index: 1, kind: input, shape index: {}]   ;;  %s2146_s2 = inlined_call_operand.hbm [shape: bf16[128,128], index: 2, kind: input, shape index: {}]   ;;  %s2147_s3 = inlined_call_operand.vmem [shape: f32[1,128], index: 3, kind: input, shape index: {}]   ;;  %s2148_s4 = inlined_call_operand.hbm [shape: bf16[128,128], index: 4, kind: input, shape index: {}]   ;;  %s2149_s5 = inlined_call_operand.vmem [shape: f32[1,128], index: 5, kind: input, shape index: {}]   ;;  %s2150_s6 = inlined_call_operand.hbm [shape: bf16[128,128], index: 6, kind: input, shape index: {}]   ;;  %s2151_s7 = inlined_call_operand.vmem [shape: f32[1,128], index: 7, kind: input, shape index: {}]   ;;  %s2152_s8 = inlined_call_operand.hbm [shape: f32[128,128], index: 8, kind: output, shape index: {}]  }
   0x1   :  { %14 = vsyncpa [#allocation6], 0 }
   0x2   :  { %15 = vsyncpa [#allocation9], 0 }
   0x3   :  { %16 = vsyncpa [#allocation4], 0  ;;  %s1772_s27 = smov [#allocation5]   ;;  %s1773_s29 = smov [#allocation8]  }
   0x4   :  { %s34_s28 = sshll.u32 %s1772_s27, 4  ;;  %s60_s30 = sshll.u32 %s1773_s29, 4  ;;  %s35_s28 = int_to_ptr.vmem [resolvable:$true] %s34_s28  ;;  %s1827_s30 = int_to_ptr.vmem [resolvable:$true] %s60_s30 }
   0x5   :  { %s1632_s11 = scalar_lea.hbm %s2145_s1, 1024 }
   0x6   :  { %p1633_p0 = scmp.ne.s32.totalorder %s2145_s1, %s1632_s11  ;;  %p1636_p1 = scmp.lt.u32.totalorder %s1632_s11, %s2145_s1 }
   0x8   :  { %p1638_p2 = pnand %p1636_p1, %p1633_p0 }
   0xa   :  { %1641 = shalt.err (!%p1638_p2)
}
   0xb   :  { %s1642_s16 = scalar_lea.vmem %s35_s28, 1024  ;;  %p1647_p4 = scmp.lt.s32.totalorder %s35_s28, %s35_s28 }
   0xc   :  { %p1643_p3 = scmp.ne.s32.totalorder %s35_s28, %s1642_s16  ;;  %p1648_p5 = scmp.lt.s32.totalorder %s1642_s16, %s1642_s16 }
   0xe   :  { %p1649_p6 = por %p1648_p5, %p1647_p4 }
  0x10   :  { %p1650_p7 = pnand %p1649_p6, %p1643_p3 }
  0x12   :  { %1653 = shalt.err (!%p1650_p7)
}
  0x13   :  { %s1774_s17 = smov 64   ;;  %s1775_s18 = smov 4  }
  0x14   :  { %40 = dma.hbm_to_vmem [thread:$0]  %s2145_s1, 1024, %s35_s28, [#allocation6], %s1774_s17, %s1774_s17, %s1775_s18  }
  0x15   :  { %s1654_s23 = scalar_lea.hbm %s2148_s4, 1024 }
  0x16   :  { %p1655_p8 = scmp.ne.s32.totalorder %s2148_s4, %s1654_s23  ;;  %p1658_p9 = scmp.lt.u32.totalorder %s1654_s23, %s2148_s4 }
  0x18   :  { %p1660_p10 = pnand %p1658_p9, %p1655_p8 }
  0x1a   :  { %1663 = shalt.err (!%p1660_p10)
}
  0x1b   :  { %s1664_s29 = scalar_lea.vmem %s1827_s30, 1024  ;;  %p1669_p12 = scmp.lt.s32.totalorder %s1827_s30, %s1827_s30 }
  0x1c   :  { %p1665_p11 = scmp.ne.s32.totalorder %s1827_s30, %s1664_s29  ;;  %p1670_p13 = scmp.lt.s32.totalorder %s1664_s29, %s1664_s29 }
  0x1e   :  { %p1671_p0 = por %p1670_p13, %p1669_p12 }
  0x20   :  { %p1672_p1 = pnand %p1671_p0, %p1665_p11 }
  0x22   :  { %1675 = shalt.err (!%p1672_p1)
}
  0x23   :  { %66 = dma.hbm_to_vmem [thread:$0]  %s2148_s4, 1024, %s1827_s30, [#allocation9], %s1774_s17, %s1774_s17, %s1775_s18  }
  0x24   :  { %s1776_s9 = smov [#allocation2]   ;;  %s1777_s11 = smov [#allocation7]  }
  0x25   :  { %s22_s10 = sshll.u32 %s1776_s9, 4  ;;  %s46_s12 = sshll.u32 %s1777_s11, 4  ;;  %s23_s10 = int_to_ptr.vmem [resolvable:$true] %s22_s10  ;;  %s1864_s12 = int_to_ptr.vmem [resolvable:$true] %s46_s12 }
  0x26   :  { %s1676_s15 = scalar_lea.hbm %s2144_s0, 1024 }
  0x27   :  { %p1677_p2 = scmp.ne.s32.totalorder %s2144_s0, %s1676_s15  ;;  %p1680_p3 = scmp.lt.u32.totalorder %s1676_s15, %s2144_s0 }
  0x29   :  { %p1682_p4 = pnand %p1680_p3, %p1677_p2 }
  0x2b   :  { %1685 = shalt.err (!%p1682_p4)
}
  0x2c   :  { %s1686_s4 = scalar_lea.vmem %s23_s10, 1024  ;;  %p1691_p6 = scmp.lt.s32.totalorder %s23_s10, %s23_s10 }
  0x2d   :  { %p1687_p5 = scmp.ne.s32.totalorder %s23_s10, %s1686_s4  ;;  %p1692_p7 = scmp.lt.s32.totalorder %s1686_s4, %s1686_s4 }
  0x2f   :  { %p1693_p8 = por %p1692_p7, %p1691_p6 }
  0x31   :  { %p1694_p9 = pnand %p1693_p8, %p1687_p5 }
  0x33   :  { %1697 = shalt.err (!%p1694_p9)
}
  0x34   :  { %28 = dma.hbm_to_vmem [thread:$0]  %s2144_s0, 1024, %s23_s10, [#allocation3], %s1774_s17, %s1774_s17, %s1775_s18  }
  0x35   :  { %s1698_s25 = scalar_lea.hbm %s2146_s2, 1024 }
  0x36   :  { %p1699_p10 = scmp.ne.s32.totalorder %s2146_s2, %s1698_s25  ;;  %p1702_p11 = scmp.lt.u32.totalorder %s1698_s25, %s2146_s2 }
  0x38   :  { %p1704_p12 = pnand %p1702_p11, %p1699_p10 }
  0x3a   :  { %1707 = shalt.err (!%p1704_p12)
}
  0x3b   :  { %s1708_s28 = scalar_lea.vmem %s1864_s12, 1024  ;;  %p1713_p0 = scmp.lt.s32.totalorder %s1864_s12, %s1864_s12 }
  0x3c   :  { %p1709_p13 = scmp.ne.s32.totalorder %s1864_s12, %s1708_s28  ;;  %p1714_p1 = scmp.lt.s32.totalorder %s1708_s28, %s1708_s28 }
  0x3e   :  { %p1715_p2 = por %p1714_p1, %p1713_p0 }
  0x40   :  { %p1716_p3 = pnand %p1715_p2, %p1709_p13 }
  0x42   :  { %1719 = shalt.err (!%p1716_p3)
}
  0x43   :  { %52 = dma.hbm_to_vmem [thread:$0]  %s2146_s2, 1024, %s1864_s12, [#allocation6], %s1774_s17, %s1774_s17, %s1775_s18  }
  0x44   :  { %s1778_s10 = smov [#allocation10]   ;;  %s1720_s15 = scalar_lea.hbm %s2150_s6, 1024 }
  0x45   :  { %s74_s11 = sshll.u32 %s1778_s10, 4  ;;  %p1721_p4 = scmp.ne.s32.totalorder %s2150_s6, %s1720_s15  ;;  %s75_s11 = int_to_ptr.vmem [resolvable:$true] %s74_s11 }
  0x46   :  { %p1724_p5 = scmp.lt.u32.totalorder %s1720_s15, %s2150_s6 }
  0x48   :  { %p1726_p6 = pnand %p1724_p5, %p1721_p4 }
  0x4a   :  { %1729 = shalt.err (!%p1726_p6)
}
  0x4b   :  { %s1730_s4 = scalar_lea.vmem %s75_s11, 1024  ;;  %p1735_p8 = scmp.lt.s32.totalorder %s75_s11, %s75_s11 }
  0x4c   :  { %p1731_p7 = scmp.ne.s32.totalorder %s75_s11, %s1730_s4  ;;  %p1736_p9 = scmp.lt.s32.totalorder %s1730_s4, %s1730_s4 }
  0x4e   :  { %p1737_p10 = por %p1736_p9, %p1735_p8 }
  0x50   :  { %p1738_p11 = pnand %p1737_p10, %p1731_p7 }
  0x52   :  { %1741 = shalt.err (!%p1738_p11)
}
  0x53   :  { %80 = dma.hbm_to_vmem [thread:$0]  %s2150_s6, 1024, %s75_s11, [#allocation9], %s1774_s17, %s1774_s17, %s1775_s18  }
  0x54   :  { %1764 = dma.done.wait [#allocation3], 1024  }
  0x55   :  { %1765 = vsyncadd [#allocation3], 4294966272 }
  0x56   :  { %1766 = dma.done.wait [#allocation6], 2048  }
  0x57   :  { %1767 = vsyncadd [#allocation6], 4294965248 }
  0x58   :  { %1768 = dma.done.wait [#allocation9], 2048  }
  0x59   :  { %1769 = vsyncadd [#allocation9], 4294965248  ;;  %v1528_v0 = vld [vmem:[#allocation5] sm:$0xff]   ;;  %v1529_v1 = vld [vmem:[#allocation5 + $0x8] sm:$0xff]  }
  0x5a   :  { %1342 = vmatprep.subr.bf16.mxu0 %v1528_v0  ;;  %v1530_v2 = vld [vmem:[#allocation5 + $0x10] sm:$0xff]   ;;  %v1531_v3 = vld [vmem:[#allocation5 + $0x18] sm:$0xff]   ;;  %v1536_v4 = vld [vmem:[#allocation2] sm:$0xff]  }
  0x5b   :  { %1343 = vmatpush3.bf16.msra.mxu0 %v1528_v0  ;;  %1358 = vmatprep.mubr.bf16.mxu0 %v1536_v4  ;;  %v1532_v5 = vld [vmem:[#allocation5 + $0x20] sm:$0xff]   ;;  %v1533_v6 = vld [vmem:[#allocation5 + $0x28] sm:$0xff]   ;;  %v1534_v9 = vld [vmem:[#allocation5 + $0x30] sm:$0xff]  }
  0x5c   :  { %1344 = vmatprep.subr.bf16.mxu0 %v1529_v1  ;;  %v1544_v7 = vld [vmem:[#allocation7] sm:$0xff]   ;;  %v1545_v8 = vld [vmem:[#allocation7 + $0x8] sm:$0xff]   ;;  %v1546_v10 = vld [vmem:[#allocation7 + $0x10] sm:$0xff]  }
  0x5d   :  { %1374 = vmatprep.subr.bf16.mxu1 %v1544_v7  ;;  %v1535_v11 = vld [vmem:[#allocation5 + $0x38] sm:$0xff]   ;;  %v1548_v13 = vld [vmem:[#allocation7 + $0x20] sm:$0xff]   ;;  %v1916_v14 = vld [vmem:[#allocation2 + $0x8] sm:$0xff]  }
  0x5e   :  { %1375 = vmatpush3.bf16.msra.mxu1 %v1544_v7  ;;  %v1547_v12 = vld [vmem:[#allocation7 + $0x18] sm:$0xff]   ;;  %v1918_v15 = vld [vmem:[#allocation2 + $0x10] sm:$0xff]   ;;  %v1549_v16 = vld [vmem:[#allocation7 + $0x28] sm:$0xff]  }
  0x5f   :  { %1345 = vmatpush3.bf16.msra.mxu0 %v1529_v1  ;;  %1376 = vmatprep.subr.bf16.mxu1 %v1545_v8  ;;  %v1550_v17 = vld [vmem:[#allocation7 + $0x30] sm:$0xff]   ;;  %v1922_v18 = vld [vmem:[#allocation2 + $0x18] sm:$0xff]   ;;  %v1924_v19 = vld [vmem:[#allocation2 + $0x20] sm:$0xff]  }
  0x60   :  { %1346 = vmatprep.subr.bf16.mxu0 %v1530_v2  ;;  %v1928_v20 = vld [vmem:[#allocation2 + $0x28] sm:$0xff]   ;;  %v1930_v21 = vld [vmem:[#allocation2 + $0x30] sm:$0xff]   ;;  %v1934_v22 = vld [vmem:[#allocation2 + $0x38] sm:$0xff]  }
  0x61   :  { %v1551_v23 = vld [vmem:[#allocation7 + $0x38] sm:$0xff]   ;;  %v1552_v48 = vld [vmem:[#allocation8] sm:$0xff]   ;;  %v1553_v49 = vld [vmem:[#allocation8 + $0x8] sm:$0xff]  }
  0x62   :  { %1377 = vmatpush3.bf16.msra.mxu1 %v1545_v8  ;;  %v1554_v50 = vld [vmem:[#allocation8 + $0x10] sm:$0xff]   ;;  %v1555_v51 = vld [vmem:[#allocation8 + $0x18] sm:$0xff]   ;;  %v1556_v52 = vld [vmem:[#allocation8 + $0x20] sm:$0xff]  }
  0x63   :  { %1347 = vmatpush3.bf16.msra.mxu0 %v1530_v2  ;;  %1378 = vmatprep.subr.bf16.mxu1 %v1546_v10  ;;  %v1557_v53 = vld [vmem:[#allocation8 + $0x28] sm:$0xff]   ;;  %v1558_v54 = vld [vmem:[#allocation8 + $0x30] sm:$0xff]   ;;  %v1235_v55 = vld [vmem:[%s2147_s3] ss:$0 sm:$0xff] }
  0x64   :  { %1348 = vmatprep.subr.bf16.mxu0 %v1531_v3 }
  0x66   :  { %1379 = vmatpush3.bf16.msra.mxu1 %v1546_v10 }
  0x67   :  { %1349 = vmatpush3.bf16.msra.mxu0 %v1531_v3  ;;  %1380 = vmatprep.subr.bf16.mxu1 %v1547_v12 }
  0x68   :  { %1350 = vmatprep.subr.bf16.mxu0 %v1532_v5 }
  0x6a   :  { %1381 = vmatpush3.bf16.msra.mxu1 %v1547_v12 }
  0x6b   :  { %1351 = vmatpush3.bf16.msra.mxu0 %v1532_v5  ;;  %1382 = vmatprep.subr.bf16.mxu1 %v1548_v13 }
  0x6c   :  { %1352 = vmatprep.subr.bf16.mxu0 %v1533_v6 }
  0x6e   :  { %1383 = vmatpush3.bf16.msra.mxu1 %v1548_v13 }
  0x6f   :  { %1353 = vmatpush3.bf16.msra.mxu0 %v1533_v6  ;;  %1384 = vmatprep.subr.bf16.mxu1 %v1549_v16 }
  0x70   :  { %1354 = vmatprep.subr.bf16.mxu0 %v1534_v9 }
  0x72   :  { %1385 = vmatpush3.bf16.msra.mxu1 %v1549_v16 }
  0x73   :  { %1355 = vmatpush3.bf16.msra.mxu0 %v1534_v9  ;;  %1386 = vmatprep.subr.bf16.mxu1 %v1550_v17 }
  0x74   :  { %1356 = vmatprep.subr.bf16.mxu0 %v1535_v11 }
  0x76   :  { %1387 = vmatpush3.bf16.msra.mxu1 %v1550_v17 }
  0x77   :  { %1357 = vmatpush3.bf16.msra.mxu0 %v1535_v11  ;;  %1388 = vmatprep.subr.bf16.mxu1 %v1551_v23 }
  0x7a   :  { %1359 = vmatmul.mubr.bf16.vlgmr.msra.gmra.mrb[0].mxu0 %v1916_v14  ;;  %1389 = vmatpush3.bf16.msra.mxu1 %v1551_v23 }
  0x7b   :  { %1362 = vmatprep.mubr.bf16.mxu0 %v1918_v15  ;;  %1438 = vmatprep.subr.bf16.mxu1 %v1552_v48 }
  0x82   :  { %1363 = vmatmul.mubr.bf16.gmra.mrb[4].mxu0 %v1922_v18 }
  0x83   :  { %1366 = vmatprep.mubr.bf16.mxu0 %v1924_v19 }
  0x8a   :  { %1367 = vmatmul.mubr.bf16.gmra.mrb[8].mxu0 %v1928_v20 }
  0x8b   :  { %1370 = vmatprep.mubr.bf16.mxu0 %v1930_v21 }
  0x92   :  { %1371 = vmatmul.mubr.bf16.gmra.mrb[12].mxu0 %v1934_v22 }
  0x93   :  { %1422 = vmatprep.mubr.bf16.mxu0 %v1536_v4 }
 0x14d   :  { %v1360_v24 = vpop.f32.mrb[0].mxu0 }
 0x14e   :  { %v261_v25 = vpop.f32.mrb[1].mxu0 }
 0x14f   :  { %v1361_v26 = vpop.f32.mrb[2].mxu0 }
 0x150   :  { %v325_v27 = vpack.c.bf16 %v1361_v26, %v1360_v24  ;;  %v264_v28 = vpop.f32.mrb[3].mxu0 }
 0x151   :  { %v324_v29 = vpack.c.bf16 %v264_v28, %v261_v25 }
 0x153   :  { %1390 = vmatprep.mubr.bf16.mxu1 %v324_v29 }
 0x154   :  { %1391 = vmatmul.mubr.bf16.vlgmr.msra.gmra.mrb[0].mxu1 %v325_v27 }
 0x155   :  { %v1364_v30 = vpop.f32.mrb[4].mxu0  ;;  %1439 = vmatpush3.bf16.msra.mxu1 %v1552_v48 }
 0x156   :  { %v277_v31 = vpop.f32.mrb[5].mxu0  ;;  %1440 = vmatprep.subr.bf16.mxu1 %v1553_v49 }
 0x157   :  { %v1365_v32 = vpop.f32.mrb[6].mxu0 }
 0x158   :  { %v327_v33 = vpack.c.bf16 %v1365_v32, %v1364_v30  ;;  %v280_v34 = vpop.f32.mrb[7].mxu0 }
 0x159   :  { %v326_v35 = vpack.c.bf16 %v280_v34, %v277_v31  ;;  %1441 = vmatpush3.bf16.msra.mxu1 %v1553_v49 }
 0x15a   :  { %1442 = vmatprep.subr.bf16.mxu1 %v1554_v50 }
 0x15b   :  { %1394 = vmatprep.mubr.bf16.mxu1 %v326_v35 }
 0x15c   :  { %1395 = vmatmul.mubr.bf16.gmra.mrb[4].mxu1 %v327_v33 }
 0x15d   :  { %v1368_v36 = vpop.f32.mrb[8].mxu0  ;;  %1443 = vmatpush3.bf16.msra.mxu1 %v1554_v50 }
 0x15e   :  { %v293_v37 = vpop.f32.mrb[9].mxu0  ;;  %1444 = vmatprep.subr.bf16.mxu1 %v1555_v51 }
 0x15f   :  { %v1369_v38 = vpop.f32.mrb[10].mxu0 }
 0x160   :  { %v329_v39 = vpack.c.bf16 %v1369_v38, %v1368_v36  ;;  %v296_v40 = vpop.f32.mrb[11].mxu0 }
 0x161   :  { %v328_v41 = vpack.c.bf16 %v296_v40, %v293_v37  ;;  %1445 = vmatpush3.bf16.msra.mxu1 %v1555_v51 }
 0x162   :  { %1446 = vmatprep.subr.bf16.mxu1 %v1556_v52 }
 0x163   :  { %1398 = vmatprep.mubr.bf16.mxu1 %v328_v41 }
 0x164   :  { %1399 = vmatmul.mubr.bf16.gmra.mrb[8].mxu1 %v329_v39 }
 0x165   :  { %v1372_v42 = vpop.f32.mrb[12].mxu0  ;;  %1447 = vmatpush3.bf16.msra.mxu1 %v1556_v52 }
 0x166   :  { %v309_v43 = vpop.f32.mrb[13].mxu0  ;;  %1448 = vmatprep.subr.bf16.mxu1 %v1557_v53 }
 0x167   :  { %v1373_v44 = vpop.f32.mrb[14].mxu0 }
 0x168   :  { %v331_v45 = vpack.c.bf16 %v1373_v44, %v1372_v42  ;;  %v312_v46 = vpop.f32.mrb[15].mxu0 }
 0x169   :  { %v330_v47 = vpack.c.bf16 %v312_v46, %v309_v43  ;;  %1449 = vmatpush3.bf16.msra.mxu1 %v1557_v53 }
 0x16a   :  { %1450 = vmatprep.subr.bf16.mxu1 %v1558_v54 }
 0x16b   :  { %1402 = vmatprep.mubr.bf16.mxu1 %v330_v47 }
 0x16c   :  { %1403 = vmatmul.mubr.bf16.gmra.mrb[12].mxu1 %v331_v45 }
 0x16d   :  { %1451 = vmatpush3.bf16.msra.mxu1 %v1558_v54 }
 0x227   :  { %v1392_v56 = vpop.f32.mrb[0].mxu1 }
 0x228   :  { %v446_v57 = vadd.f32 %v1392_v56, %v1235_v55  ;;  %v437_v58 = vpop.f32.mrb[1].mxu1  ;;  %v1560_v56 = vld [vmem:[#allocation10] sm:$0xff]  }
 0x229   :  { %v438_v59 = vadd.f32 %v1235_v55, %v437_v58  ;;  %v1393_v60 = vpop.f32.mrb[2].mxu1 }
 0x22a   :  { %v449_v61 = vadd.f32 %v1393_v60, %v1235_v55  ;;  %v440_v62 = vpop.f32.mrb[3].mxu1  ;;  %v502_v0 = vmax.f32 %v446_v57, 0.0  ;;  %v1561_v57 = vld [vmem:[#allocation10 + $0x8] sm:$0xff]  }
 0x22b   :  { %v441_v63 = vadd.f32 %v1235_v55, %v440_v62  ;;  %v500_v2 = vmax.f32 %v438_v59, 0.0 }
 0x22c   :  { %v503_v1 = vmax.f32 %v449_v61, 0.0 }
 0x22d   :  { %v501_v3 = vmax.f32 %v441_v63, 0.0 }
 0x22e   :  { %v517_v4 = vpack.c.bf16 %v503_v1, %v502_v0 }
 0x22f   :  { %v516_v5 = vpack.c.bf16 %v501_v3, %v500_v2  ;;  %v1396_v6 = vpop.f32.mrb[4].mxu1 }
 0x230   :  { %v462_v7 = vadd.f32 %v1396_v6, %v1235_v55  ;;  %v453_v8 = vpop.f32.mrb[5].mxu1 }
 0x231   :  { %v454_v9 = vadd.f32 %v1235_v55, %v453_v8  ;;  %v1397_v10 = vpop.f32.mrb[6].mxu1  ;;  %1406 = vmatprep.subr.bf16.mxu0 %v516_v5 }
 0x232   :  { %v465_v11 = vadd.f32 %v1397_v10, %v1235_v55  ;;  %v456_v12 = vpop.f32.mrb[7].mxu1  ;;  %1407 = vmatpush3.bf16.msra.mxu0 %v516_v5  ;;  %v506_v16 = vmax.f32 %v462_v7, 0.0 }
 0x233   :  { %v457_v13 = vadd.f32 %v1235_v55, %v456_v12  ;;  %1408 = vmatprep.subr.bf16.mxu0 %v517_v4  ;;  %v504_v23 = vmax.f32 %v454_v9, 0.0 }
 0x234   :  { %v507_v17 = vmax.f32 %v465_v11, 0.0 }
 0x235   :  { %v505_v24 = vmax.f32 %v457_v13, 0.0 }
 0x236   :  { %v519_v25 = vpack.c.bf16 %v507_v17, %v506_v16  ;;  %1409 = vmatpush3.bf16.msra.mxu0 %v517_v4  ;;  %v1566_v17 = vld [vmem:[#allocation10 + $0x30] sm:$0xff]  }
 0x237   :  { %v518_v26 = vpack.c.bf16 %v505_v24, %v504_v23  ;;  %v1400_v27 = vpop.f32.mrb[8].mxu1  ;;  %v1567_v23 = vld [vmem:[#allocation10 + $0x38] sm:$0xff]   ;;  %v1244_v24 = vld [vmem:[%s2149_s5] ss:$0 sm:$0xff] }
 0x238   :  { %v478_v28 = vadd.f32 %v1400_v27, %v1235_v55  ;;  %v469_v29 = vpop.f32.mrb[9].mxu1 }
 0x239   :  { %v470_v30 = vadd.f32 %v1235_v55, %v469_v29  ;;  %v1401_v31 = vpop.f32.mrb[10].mxu1  ;;  %1410 = vmatprep.subr.bf16.mxu0 %v518_v26 }
 0x23a   :  { %v481_v32 = vadd.f32 %v1401_v31, %v1235_v55  ;;  %v472_v33 = vpop.f32.mrb[11].mxu1  ;;  %1411 = vmatpush3.bf16.msra.mxu0 %v518_v26  ;;  %v510_v35 = vmax.f32 %v478_v28, 0.0 }
 0x23b   :  { %v473_v34 = vadd.f32 %v1235_v55, %v472_v33  ;;  %1412 = vmatprep.subr.bf16.mxu0 %v519_v25  ;;  %v508_v37 = vmax.f32 %v470_v30, 0.0 }
 0x23c   :  { %v511_v36 = vmax.f32 %v481_v32, 0.0 }
 0x23d   :  { %v509_v38 = vmax.f32 %v473_v34, 0.0 }
 0x23e   :  { %v521_v39 = vpack.c.bf16 %v511_v36, %v510_v35  ;;  %1413 = vmatpush3.bf16.msra.mxu0 %v519_v25 }
 0x23f   :  { %v520_v40 = vpack.c.bf16 %v509_v38, %v508_v37  ;;  %v1404_v41 = vpop.f32.mrb[12].mxu1 }
 0x240   :  { %v494_v42 = vadd.f32 %v1404_v41, %v1235_v55  ;;  %v485_v43 = vpop.f32.mrb[13].mxu1 }
 0x241   :  { %v486_v44 = vadd.f32 %v1235_v55, %v485_v43  ;;  %v1405_v45 = vpop.f32.mrb[14].mxu1  ;;  %1414 = vmatprep.subr.bf16.mxu0 %v520_v40 }
 0x242   :  { %v497_v46 = vadd.f32 %v1405_v45, %v1235_v55  ;;  %v488_v47 = vpop.f32.mrb[15].mxu1  ;;  %1415 = vmatpush3.bf16.msra.mxu0 %v520_v40  ;;  %v514_v49 = vmax.f32 %v494_v42, 0.0 }
 0x243   :  { %v489_v48 = vadd.f32 %v1235_v55, %v488_v47  ;;  %1416 = vmatprep.subr.bf16.mxu0 %v521_v39  ;;  %v512_v51 = vmax.f32 %v486_v44, 0.0  ;;  %v1559_v55 = vld [vmem:[#allocation8 + $0x38] sm:$0xff]  }
 0x244   :  { %v515_v50 = vmax.f32 %v497_v46, 0.0  ;;  %1452 = vmatprep.subr.bf16.mxu1 %v1559_v55 }
 0x245   :  { %v513_v52 = vmax.f32 %v489_v48, 0.0  ;;  %1453 = vmatpush3.bf16.msra.mxu1 %v1559_v55 }
 0x246   :  { %v523_v53 = vpack.c.bf16 %v515_v50, %v514_v49  ;;  %1417 = vmatpush3.bf16.msra.mxu0 %v521_v39  ;;  %1502 = vmatprep.subr.bf16.mxu1 %v1560_v56 }
 0x247   :  { %v522_v54 = vpack.c.bf16 %v513_v52, %v512_v51 }
 0x249   :  { %1418 = vmatprep.subr.bf16.mxu0 %v522_v54 }
 0x24a   :  { %1419 = vmatpush3.bf16.msra.mxu0 %v522_v54 }
 0x24b   :  { %1420 = vmatprep.subr.bf16.mxu0 %v523_v53 }
 0x24e   :  { %1421 = vmatpush3.bf16.msra.mxu0 %v523_v53 }
 0x24f   :  { %1470 = vmatprep.subr.bf16.mxu0 %v1560_v56 }
 0x251   :  { %1423 = vmatmul.mubr.bf16.vlgmr.msra.gmra.mrb[16].mxu0 %v1916_v14  ;;  %v1562_v14 = vld [vmem:[#allocation10 + $0x10] sm:$0xff]  }
 0x252   :  { %1426 = vmatprep.mubr.bf16.mxu0 %v1918_v15  ;;  %1471 = vmatpush3.bf16.msra.mxu0 %v1560_v56  ;;  %v1563_v15 = vld [vmem:[#allocation10 + $0x18] sm:$0xff]  }
 0x253   :  { %1472 = vmatprep.subr.bf16.mxu0 %v1561_v57 }
 0x256   :  { %1473 = vmatpush3.bf16.msra.mxu0 %v1561_v57 }
 0x257   :  { %1474 = vmatprep.subr.bf16.mxu0 %v1562_v14 }
 0x259   :  { %1427 = vmatmul.mubr.bf16.gmra.mrb[20].mxu0 %v1922_v18  ;;  %v1564_v18 = vld [vmem:[#allocation10 + $0x20] sm:$0xff]  }
 0x25a   :  { %1430 = vmatprep.mubr.bf16.mxu0 %v1924_v19  ;;  %1475 = vmatpush3.bf16.msra.mxu0 %v1562_v14  ;;  %v1565_v19 = vld [vmem:[#allocation10 + $0x28] sm:$0xff]  }
 0x25b   :  { %1476 = vmatprep.subr.bf16.mxu0 %v1563_v15 }
 0x25e   :  { %1477 = vmatpush3.bf16.msra.mxu0 %v1563_v15 }
 0x25f   :  { %1478 = vmatprep.subr.bf16.mxu0 %v1564_v18 }
 0x261   :  { %1431 = vmatmul.mubr.bf16.gmra.mrb[24].mxu0 %v1928_v20 }
 0x262   :  { %1434 = vmatprep.mubr.bf16.mxu0 %v1930_v21  ;;  %1479 = vmatpush3.bf16.msra.mxu0 %v1564_v18 }
 0x263   :  { %1480 = vmatprep.subr.bf16.mxu0 %v1565_v19 }
 0x266   :  { %1481 = vmatpush3.bf16.msra.mxu0 %v1565_v19 }
 0x267   :  { %1482 = vmatprep.subr.bf16.mxu0 %v1566_v17 }
 0x269   :  { %1435 = vmatmul.mubr.bf16.gmra.mrb[28].mxu0 %v1934_v22 }
 0x26a   :  { %1483 = vmatpush3.bf16.msra.mxu0 %v1566_v17 }
 0x26b   :  { %1484 = vmatprep.subr.bf16.mxu0 %v1567_v23 }
 0x26e   :  { %1485 = vmatpush3.bf16.msra.mxu0 %v1567_v23 }
 0x324   :  { %v1424_v20 = vpop.f32.mrb[16].mxu0 }
 0x325   :  { %v558_v21 = vpop.f32.mrb[17].mxu0 }
 0x326   :  { %v1425_v22 = vpop.f32.mrb[18].mxu0 }
 0x327   :  { %v622_v58 = vpack.c.bf16 %v1425_v22, %v1424_v20  ;;  %v561_v59 = vpop.f32.mrb[19].mxu0 }
 0x328   :  { %v621_v60 = vpack.c.bf16 %v561_v59, %v558_v21 }
 0x32a   :  { %1454 = vmatprep.mubr.bf16.mxu1 %v621_v60 }
 0x32b   :  { %1455 = vmatmul.mubr.bf16.vlgmr.msra.gmra.mrb[16].mxu1 %v622_v58 }
 0x32c   :  { %v1428_v61 = vpop.f32.mrb[20].mxu0  ;;  %1510 = vmatpush3.bf16.msra.mxu1 %v1560_v56 }
 0x32d   :  { %v574_v62 = vpop.f32.mrb[21].mxu0  ;;  %1503 = vmatprep.subr.bf16.mxu1 %v1561_v57 }
 0x32e   :  { %v1429_v63 = vpop.f32.mrb[22].mxu0 }
 0x32f   :  { %v624_v0 = vpack.c.bf16 %v1429_v63, %v1428_v61  ;;  %v577_v1 = vpop.f32.mrb[23].mxu0 }
 0x330   :  { %v623_v2 = vpack.c.bf16 %v577_v1, %v574_v62  ;;  %1511 = vmatpush3.bf16.msra.mxu1 %v1561_v57 }
 0x331   :  { %1504 = vmatprep.subr.bf16.mxu1 %v1562_v14 }
 0x332   :  { %1458 = vmatprep.mubr.bf16.mxu1 %v623_v2 }
 0x333   :  { %1459 = vmatmul.mubr.bf16.gmra.mrb[20].mxu1 %v624_v0 }
 0x334   :  { %v1432_v3 = vpop.f32.mrb[24].mxu0  ;;  %1512 = vmatpush3.bf16.msra.mxu1 %v1562_v14 }
 0x335   :  { %v590_v4 = vpop.f32.mrb[25].mxu0  ;;  %1505 = vmatprep.subr.bf16.mxu1 %v1563_v15 }
 0x336   :  { %v1433_v5 = vpop.f32.mrb[26].mxu0 }
 0x337   :  { %v626_v6 = vpack.c.bf16 %v1433_v5, %v1432_v3  ;;  %v593_v7 = vpop.f32.mrb[27].mxu0 }
 0x338   :  { %v625_v8 = vpack.c.bf16 %v593_v7, %v590_v4  ;;  %1513 = vmatpush3.bf16.msra.mxu1 %v1563_v15 }
 0x339   :  { %1506 = vmatprep.subr.bf16.mxu1 %v1564_v18 }
 0x33a   :  { %1462 = vmatprep.mubr.bf16.mxu1 %v625_v8 }
 0x33b   :  { %1463 = vmatmul.mubr.bf16.gmra.mrb[24].mxu1 %v626_v6 }
 0x33c   :  { %v1436_v9 = vpop.f32.mrb[28].mxu0  ;;  %1514 = vmatpush3.bf16.msra.mxu1 %v1564_v18 }
 0x33d   :  { %v606_v10 = vpop.f32.mrb[29].mxu0  ;;  %1507 = vmatprep.subr.bf16.mxu1 %v1565_v19 }
 0x33e   :  { %v1437_v11 = vpop.f32.mrb[30].mxu0 }
 0x33f   :  { %v628_v12 = vpack.c.bf16 %v1437_v11, %v1436_v9  ;;  %v609_v13 = vpop.f32.mrb[31].mxu0 }
 0x340   :  { %v627_v16 = vpack.c.bf16 %v609_v13, %v606_v10  ;;  %1515 = vmatpush3.bf16.msra.mxu1 %v1565_v19  ;;  %v989_v10 = vlaneseq }
 0x341   :  { %1508 = vmatprep.subr.bf16.mxu1 %v1566_v17 }
 0x342   :  { %1466 = vmatprep.mubr.bf16.mxu1 %v627_v16  ;;  %v1950_v11 = vand.u32 127, %v989_v10 }
 0x343   :  { %1467 = vmatmul.mubr.bf16.gmra.mrb[28].mxu1 %v628_v12  ;;  %v1253_v12 = vld [vmem:[%s2151_s7] ss:$0 sm:$0xff]  ;;  %s1779_s7 = smov [#allocation11]  }
 0x344   :  { %1516 = vmatpush3.bf16.msra.mxu1 %v1566_v17  ;;  %vm991_vm0 = vcmp.lt.s32.totalorder %v1950_v11, 8  ;;  %s1205_s22 = sshll.u32 %s1779_s7, 4  ;;  %s1206_s22 = int_to_ptr.vmem [resolvable:$true] %s1205_s22 }
 0x345   :  { %1509 = vmatprep.subr.bf16.mxu1 %v1567_v23  ;;  %s1742_s23 = scalar_lea.vmem %s1206_s22, 2048  ;;  %p1747_p13 = scmp.lt.s32.totalorder %s1206_s22, %s1206_s22 }
 0x346   :  { %p1743_p12 = scmp.ne.s32.totalorder %s1206_s22, %s1742_s23  ;;  %p1748_p0 = scmp.lt.s32.totalorder %s1742_s23, %s1742_s23 }
 0x348   :  { %1517 = vmatpush3.bf16.msra.mxu1 %v1567_v23  ;;  %p1749_p1 = por %p1748_p0, %p1747_p13 }
 0x34a   :  { %p1750_p2 = pnand %p1749_p1, %p1743_p12 }
 0x3fe   :  { %v1456_v25 = vpop.f32.mrb[16].mxu1 }
 0x3ff   :  { %v743_v26 = vadd.f32 %v1456_v25, %v1244_v24  ;;  %v734_v27 = vpop.f32.mrb[17].mxu1 }
 0x400   :  { %v735_v28 = vadd.f32 %v1244_v24, %v734_v27  ;;  %v1457_v29 = vpop.f32.mrb[18].mxu1 }
 0x401   :  { %v746_v30 = vadd.f32 %v1457_v29, %v1244_v24  ;;  %v737_v31 = vpop.f32.mrb[19].mxu1  ;;  %v799_v33 = vmax.f32 %v743_v26, 0.0 }
 0x402   :  { %v738_v32 = vadd.f32 %v1244_v24, %v737_v31  ;;  %v797_v35 = vmax.f32 %v735_v28, 0.0 }
 0x403   :  { %v800_v34 = vmax.f32 %v746_v30, 0.0 }
 0x404   :  { %v798_v36 = vmax.f32 %v738_v32, 0.0 }
 0x405   :  { %v814_v37 = vpack.c.bf16 %v800_v34, %v799_v33 }
 0x406   :  { %v813_v38 = vpack.c.bf16 %v798_v36, %v797_v35  ;;  %v1460_v39 = vpop.f32.mrb[20].mxu1 }
 0x407   :  { %v759_v40 = vadd.f32 %v1460_v39, %v1244_v24  ;;  %v750_v41 = vpop.f32.mrb[21].mxu1 }
 0x408   :  { %v751_v42 = vadd.f32 %v1244_v24, %v750_v41  ;;  %v1461_v43 = vpop.f32.mrb[22].mxu1  ;;  %1486 = vmatprep.mubr.bf16.mxu0 %v813_v38 }
 0x409   :  { %v762_v44 = vadd.f32 %v1461_v43, %v1244_v24  ;;  %v753_v45 = vpop.f32.mrb[23].mxu1  ;;  %1487 = vmatmul.mubr.bf16.vlgmr.msra.gmra.mrb[32].mxu0 %v814_v37  ;;  %v803_v47 = vmax.f32 %v759_v40, 0.0 }
 0x40a   :  { %v754_v46 = vadd.f32 %v1244_v24, %v753_v45  ;;  %v801_v49 = vmax.f32 %v751_v42, 0.0 }
 0x40b   :  { %v804_v48 = vmax.f32 %v762_v44, 0.0 }
 0x40c   :  { %v802_v50 = vmax.f32 %v754_v46, 0.0 }
 0x40d   :  { %v816_v51 = vpack.c.bf16 %v804_v48, %v803_v47 }
 0x40e   :  { %v815_v52 = vpack.c.bf16 %v802_v50, %v801_v49  ;;  %v1464_v53 = vpop.f32.mrb[24].mxu1 }
 0x40f   :  { %v775_v54 = vadd.f32 %v1464_v53, %v1244_v24  ;;  %v766_v55 = vpop.f32.mrb[25].mxu1 }
 0x410   :  { %v767_v56 = vadd.f32 %v1244_v24, %v766_v55  ;;  %v1465_v57 = vpop.f32.mrb[26].mxu1  ;;  %1490 = vmatprep.mubr.bf16.mxu0 %v815_v52 }
 0x411   :  { %v778_v14 = vadd.f32 %v1465_v57, %v1244_v24  ;;  %v769_v15 = vpop.f32.mrb[27].mxu1  ;;  %1491 = vmatmul.mubr.bf16.gmra.mrb[36].mxu0 %v816_v51  ;;  %v807_v19 = vmax.f32 %v775_v54, 0.0 }
 0x412   :  { %v770_v18 = vadd.f32 %v1244_v24, %v769_v15  ;;  %v805_v21 = vmax.f32 %v767_v56, 0.0 }
 0x413   :  { %v808_v20 = vmax.f32 %v778_v14, 0.0 }
 0x414   :  { %v806_v22 = vmax.f32 %v770_v18, 0.0 }
 0x415   :  { %v818_v58 = vpack.c.bf16 %v808_v20, %v807_v19 }
 0x416   :  { %v817_v59 = vpack.c.bf16 %v806_v22, %v805_v21  ;;  %v1468_v60 = vpop.f32.mrb[28].mxu1 }
 0x417   :  { %v791_v61 = vadd.f32 %v1468_v60, %v1244_v24  ;;  %v782_v62 = vpop.f32.mrb[29].mxu1 }
 0x418   :  { %v783_v63 = vadd.f32 %v1244_v24, %v782_v62  ;;  %v1469_v0 = vpop.f32.mrb[30].mxu1  ;;  %1494 = vmatprep.mubr.bf16.mxu1 %v817_v59 }
 0x419   :  { %v794_v1 = vadd.f32 %v1469_v0, %v1244_v24  ;;  %v785_v2 = vpop.f32.mrb[31].mxu1  ;;  %1495 = vmatmul.mubr.bf16.vlgmr.msra.gmra.mrb[32].mxu1 %v818_v58  ;;  %v811_v4 = vmax.f32 %v791_v61, 0.0 }
 0x41a   :  { %v786_v3 = vadd.f32 %v1244_v24, %v785_v2  ;;  %v809_v6 = vmax.f32 %v783_v63, 0.0 }
 0x41b   :  { %v812_v5 = vmax.f32 %v794_v1, 0.0 }
 0x41c   :  { %v810_v7 = vmax.f32 %v786_v3, 0.0 }
 0x41d   :  { %v820_v8 = vpack.c.bf16 %v812_v5, %v811_v4 }
 0x41e   :  { %v819_v9 = vpack.c.bf16 %v810_v7, %v809_v6 }
 0x420   :  { %1498 = vmatprep.mubr.bf16.mxu1 %v819_v9 }
 0x421   :  { %1499 = vmatmul.mubr.bf16.gmra.mrb[36].mxu1 %v820_v8 }
 0x4dc   :  { %v1488_v13 = vpop.f32.mrb[32].mxu0 }
 0x4dd   :  { %v935_v16 = vadd.f32 %v1488_v13, %v1253_v12  ;;  %v926_v17 = vpop.f32.mrb[33].mxu0 }
 0x4de   :  { %v927_v23 = vadd.f32 %v1253_v12, %v926_v17  ;;  %v1489_v24 = vpop.f32.mrb[34].mxu0 }
 0x4df   :  { %v938_v25 = vadd.f32 %v1489_v24, %v1253_v12  ;;  %v929_v26 = vpop.f32.mrb[35].mxu0  ;;  %v1958_v27 = vsel %vm991_vm0, %v935_v16, -1e+30 }
 0x4e0   :  { %v930_v28 = vadd.f32 %v1253_v12, %v929_v26  ;;  %1012 = vmax.xlane.f32.xlu1 %v1958_v27  ;;  %v1963_v29 = vsel %vm991_vm0, %v927_v23, -1e+30 }
 0x4e1   :  { %1008 = vmax.xlane.f32.xlu0 %v1963_v29  ;;  %v1968_v30 = vsel %vm991_vm0, %v938_v25, -1e+30 }
 0x4e2   :  { %v1973_v32 = vsel %vm991_vm0, %v930_v28, -1e+30 }
 0x4e4   :  { %1014 = vmax.xlane.f32.xlu1 %v1968_v30  ;;  %v1492_v31 = vpop.f32.mrb[36].mxu0 }
 0x4e5   :  { %v951_v33 = vadd.f32 %v1492_v31, %v1253_v12  ;;  %v942_v34 = vpop.f32.mrb[37].mxu0  ;;  %1010 = vmax.xlane.f32.xlu0 %v1973_v32 }
 0x4e6   :  { %v1493_v35 = vpop.f32.mrb[38].mxu0  ;;  %v943_v39 = vadd.f32 %v1253_v12, %v942_v34 }
 0x4e7   :  { %v954_v36 = vadd.f32 %v1493_v35, %v1253_v12  ;;  %v945_v37 = vpop.f32.mrb[39].mxu0  ;;  %v1978_v38 = vsel %vm991_vm0, %v951_v33, -1e+30 }
 0x4e8   :  { %v946_v40 = vadd.f32 %v1253_v12, %v945_v37  ;;  %v1988_v43 = vsel %vm991_vm0, %v943_v39, -1e+30 }
 0x4e9   :  { %1020 = vmax.xlane.f32.xlu0 %v1978_v38  ;;  %v1983_v41 = vsel %vm991_vm0, %v954_v36, -1e+30 }
 0x4ea   :  { %1022 = vmax.xlane.f32.xlu1 %v1983_v41  ;;  %v1993_v46 = vsel %vm991_vm0, %v946_v40, -1e+30 }
 0x4ec   :  { %v1496_v42 = vpop.f32.mrb[32].mxu1 }
 0x4ed   :  { %v967_v44 = vadd.f32 %v1496_v42, %v1253_v12  ;;  %1016 = vmax.xlane.f32.xlu0 %v1988_v43  ;;  %v958_v45 = vpop.f32.mrb[33].mxu1 }
 0x4ee   :  { %1018 = vmax.xlane.f32.xlu1 %v1993_v46  ;;  %v1497_v47 = vpop.f32.mrb[34].mxu1  ;;  %v959_v51 = vadd.f32 %v1253_v12, %v958_v45 }
 0x4ef   :  { %v970_v48 = vadd.f32 %v1497_v47, %v1253_v12  ;;  %v961_v49 = vpop.f32.mrb[35].mxu1  ;;  %v1998_v50 = vsel %vm991_vm0, %v967_v44, -1e+30 }
 0x4f0   :  { %v962_v52 = vadd.f32 %v1253_v12, %v961_v49  ;;  %v2008_v55 = vsel %vm991_vm0, %v959_v51, -1e+30 }
 0x4f1   :  { %1028 = vmax.xlane.f32.xlu0 %v1998_v50  ;;  %v2003_v53 = vsel %vm991_vm0, %v970_v48, -1e+30 }
 0x4f2   :  { %1030 = vmax.xlane.f32.xlu1 %v2003_v53  ;;  %v2013_v57 = vsel %vm991_vm0, %v962_v52, -1e+30 }
 0x4f4   :  { %v1500_v54 = vpop.f32.mrb[36].mxu1 }
 0x4f5   :  { %1024 = vmax.xlane.f32.xlu0 %v2008_v55  ;;  %v974_v56 = vpop.f32.mrb[37].mxu1  ;;  %v983_v19 = vadd.f32 %v1500_v54, %v1253_v12 }
 0x4f6   :  { %v975_v14 = vadd.f32 %v1253_v12, %v974_v56  ;;  %1026 = vmax.xlane.f32.xlu1 %v2013_v57  ;;  %v1501_v15 = vpop.f32.mrb[38].mxu1 }
 0x4f7   :  { %v977_v18 = vpop.f32.mrb[39].mxu1  ;;  %v986_v22 = vadd.f32 %v1501_v15, %v1253_v12  ;;  %v2028_v59 = vsel %vm991_vm0, %v983_v19, -1e+30 }
 0x4f8   :  { %v978_v20 = vadd.f32 %v1253_v12, %v977_v18  ;;  %v2018_v21 = vsel %vm991_vm0, %v975_v14, -1e+30 }
 0x4f9   :  { %1032 = vmax.xlane.f32.xlu0 %v2018_v21  ;;  %v2033_v60 = vsel %vm991_vm0, %v986_v22, -1e+30 }
 0x4fa   :  { %v2023_v58 = vsel %vm991_vm0, %v978_v20, -1e+30 }
 0x4fb   :  { %1034 = vmax.xlane.f32.xlu1 %v2023_v58 }
 0x4fd   :  { %1036 = vmax.xlane.f32.xlu0 %v2028_v59 }
 0x4ff   :  { %1038 = vmax.xlane.f32.xlu1 %v2033_v60 }
 0x56d   :  { %v2036_v61 = vpop.xlane.xlu1 %1012 }
 0x56e   :  { %v1042_v62 = vsub.f32 %v1958_v27, %v2036_v61  ;;  %v2040_v63 = vpop.xlane.xlu0 %1008 }
 0x56f   :  { %v1040_v0 = vsub.f32 %v1963_v29, %v2040_v63 }
 0x570   :  { %v1060_v1 = vmul.f32 1.442695, %v1042_v62 }
 0x571   :  { %v1056_v2 = vmul.f32 1.442695, %v1040_v0  ;;  %v2044_v3 = vpop.xlane.xlu1 %1014 }
 0x572   :  { %1568 = vpow2.f32 %v1060_v1  ;;  %v1043_v4 = vsub.f32 %v1968_v30, %v2044_v3  ;;  %v2048_v5 = vpop.xlane.xlu0 %1010 }
 0x573   :  { %v1041_v6 = vsub.f32 %v1973_v32, %v2048_v5  ;;  %1570 = vpow2.f32 %v1056_v2 }
 0x574   :  { %v1062_v7 = vmul.f32 1.442695, %v1043_v4 }
 0x575   :  { %v1058_v8 = vmul.f32 1.442695, %v1041_v6 }
 0x576   :  { %1572 = vpow2.f32 %v1062_v7  ;;  %v2052_v9 = vpop.xlane.xlu0 %1020 }
 0x577   :  { %v1046_v10 = vsub.f32 %v1978_v38, %v2052_v9  ;;  %v2056_v11 = vpop.xlane.xlu1 %1022  ;;  %1574 = vpow2.f32 %v1058_v8 }
 0x578   :  { %v1047_v12 = vsub.f32 %v1983_v41, %v2056_v11 }
 0x579   :  { %v1068_v13 = vmul.f32 1.442695, %v1046_v10 }
 0x57a   :  { %v1070_v16 = vmul.f32 1.442695, %v1047_v12  ;;  %v2060_v17 = vpop.xlane.xlu0 %1016 }
 0x57b   :  { %1576 = vpow2.f32 %v1068_v13  ;;  %v1044_v23 = vsub.f32 %v1988_v43, %v2060_v17  ;;  %v2064_v24 = vpop.xlane.xlu1 %1018 }
 0x57c   :  { %v1569_v25 = vpop.eup %1568  ;;  %v1045_v26 = vsub.f32 %v1993_v46, %v2064_v24  ;;  %1578 = vpow2.f32 %v1070_v16 }
 0x57d   :  { %v1064_v28 = vmul.f32 1.442695, %v1044_v23  ;;  %1092 = vadd.xlane.f32.xlu0 %v1569_v25  ;;  %v1571_v34 = vpop.eup %1570 }
 0x57e   :  { %v1066_v31 = vmul.f32 1.442695, %v1045_v26  ;;  %v2068_v33 = vpop.xlane.xlu0 %1028 }
 0x57f   :  { %1580 = vpow2.f32 %v1064_v28  ;;  %v1050_v35 = vsub.f32 %v1998_v50, %v2068_v33  ;;  %v2072_v36 = vpop.xlane.xlu1 %1030 }
 0x580   :  { %v1573_v37 = vpop.eup %1572  ;;  %v1051_v39 = vsub.f32 %v2003_v53, %v2072_v36  ;;  %1582 = vpow2.f32 %v1066_v31 }
 0x581   :  { %v1076_v40 = vmul.f32 1.442695, %v1050_v35  ;;  %1094 = vadd.xlane.f32.xlu1 %v1573_v37  ;;  %1088 = vadd.xlane.f32.xlu0 %v1571_v34  ;;  %v1575_v48 = vpop.eup %1574 }
 0x582   :  { %v1078_v42 = vmul.f32 1.442695, %v1051_v39  ;;  %v2076_v44 = vpop.xlane.xlu0 %1024 }
 0x583   :  { %1584 = vpow2.f32 %v1076_v40  ;;  %v1048_v45 = vsub.f32 %v2008_v55, %v2076_v44  ;;  %v2080_v47 = vpop.xlane.xlu1 %1026 }
 0x584   :  { %v1049_v49 = vsub.f32 %v2013_v57, %v2080_v47  ;;  %1586 = vpow2.f32 %v1078_v42 }
 0x585   :  { %v1577_v51 = vpop.eup %1576  ;;  %v1072_v52 = vmul.f32 1.442695, %v1048_v45  ;;  %1090 = vadd.xlane.f32.xlu1 %v1575_v48 }
 0x586   :  { %v1074_v54 = vmul.f32 1.442695, %v1049_v49  ;;  %1100 = vadd.xlane.f32.xlu0 %v1577_v51  ;;  %v2084_v56 = vpop.xlane.xlu0 %1032  ;;  %v1579_v15 = vpop.eup %1578 }
 0x587   :  { %1588 = vpow2.f32 %v1072_v52  ;;  %v1052_v14 = vsub.f32 %v2018_v21, %v2084_v56 }
 0x588   :  { %v2088_v18 = vpop.xlane.xlu1 %1034  ;;  %1590 = vpow2.f32 %v1074_v54 }
 0x589   :  { %v1581_v19 = vpop.eup %1580  ;;  %v1080_v20 = vmul.f32 1.442695, %v1052_v14  ;;  %v1053_v22 = vsub.f32 %v2023_v58, %v2088_v18  ;;  %1102 = vadd.xlane.f32.xlu1 %v1579_v15 }
 0x58a   :  { %1096 = vadd.xlane.f32.xlu0 %v1581_v19  ;;  %v2092_v62 = vpop.xlane.xlu0 %1036  ;;  %v1583_v2 = vpop.eup %1582 }
 0x58b   :  { %1592 = vpow2.f32 %v1080_v20  ;;  %v1082_v0 = vmul.f32 1.442695, %v1053_v22  ;;  %v1054_v1 = vsub.f32 %v2028_v59, %v2092_v62 }
 0x58c   :  { %v2096_v4 = vpop.xlane.xlu1 %1038 }
 0x58d   :  { %v1585_v6 = vpop.eup %1584  ;;  %1594 = vpow2.f32 %v1082_v0  ;;  %v1084_v7 = vmul.f32 1.442695, %v1054_v1  ;;  %v1055_v8 = vsub.f32 %v2033_v60, %v2096_v4  ;;  %1098 = vadd.xlane.f32.xlu1 %v1583_v2 }
 0x58e   :  { %1108 = vadd.xlane.f32.xlu0 %v1585_v6  ;;  %v1587_v12 = vpop.eup %1586 }
 0x58f   :  { %1596 = vpow2.f32 %v1084_v7  ;;  %v1086_v10 = vmul.f32 1.442695, %v1055_v8 }
 0x591   :  { %v1589_v13 = vpop.eup %1588  ;;  %1598 = vpow2.f32 %v1086_v10  ;;  %1110 = vadd.xlane.f32.xlu1 %v1587_v12 }
 0x592   :  { %1104 = vadd.xlane.f32.xlu0 %v1589_v13  ;;  %v1591_v16 = vpop.eup %1590 }
 0x595   :  { %v1593_v23 = vpop.eup %1592  ;;  %1106 = vadd.xlane.f32.xlu1 %v1591_v16 }
 0x596   :  { %1112 = vadd.xlane.f32.xlu0 %v1593_v23 }
 0x597   :  { %v1595_v25 = vpop.eup %1594 }
 0x599   :  { %v1597_v26 = vpop.eup %1596  ;;  %1114 = vadd.xlane.f32.xlu1 %v1595_v25 }
 0x59a   :  { %1116 = vadd.xlane.f32.xlu0 %v1597_v26 }
 0x59b   :  { %v1599_v28 = vpop.eup %1598 }
 0x59d   :  { %1118 = vadd.xlane.f32.xlu1 %v1599_v28 }
 0x60a   :  { %v1093_v31 = vpop.xlane.xlu0 %1092 }
 0x60b   :  { %1600 = vlog2.f32 %v1093_v31 }
 0x60e   :  { %v1095_v34 = vpop.xlane.xlu1 %1094  ;;  %v1089_v35 = vpop.xlane.xlu0 %1088 }
 0x60f   :  { %1602 = vlog2.f32 %v1095_v34 }
 0x610   :  { %1604 = vlog2.f32 %v1089_v35 }
 0x612   :  { %v1091_v37 = vpop.xlane.xlu1 %1090 }
 0x613   :  { %1606 = vlog2.f32 %v1091_v37  ;;  %v1101_v39 = vpop.xlane.xlu0 %1100 }
 0x614   :  { %1608 = vlog2.f32 %v1101_v39 }
 0x615   :  { %v1601_v40 = vpop.eup %1600 }
 0x616   :  { %v1125_v42 = vmul.f32 0.6931472, %v1601_v40  ;;  %v1103_v45 = vpop.xlane.xlu1 %1102 }
 0x617   :  { %1610 = vlog2.f32 %v1103_v45  ;;  %v1097_v48 = vpop.xlane.xlu0 %1096 }
 0x618   :  { %v1154_v49 = vadd.f32 %v1125_v42, %v2036_v61  ;;  %1612 = vlog2.f32 %v1097_v48 }
 0x619   :  { %v1603_v51 = vpop.eup %1602 }
 0x61a   :  { %v1605_v52 = vpop.eup %1604  ;;  %v1170_v54 = vsub.f32 %v1958_v27, %v1154_v49  ;;  %v1127_v14 = vmul.f32 0.6931472, %v1603_v51  ;;  %v1099_v15 = vpop.xlane.xlu1 %1098 }
 0x61b   :  { %v1121_v19 = vmul.f32 0.6931472, %v1605_v52  ;;  %1614 = vlog2.f32 %v1099_v15  ;;  %v1109_v20 = vpop.xlane.xlu0 %1108 }
 0x61c   :  { %1186 = vst [vmem:[#allocation11 + $0x10] sm:$0xff] %v1170_v54  ;;  %v1155_v22 = vadd.f32 %v1127_v14, %v2044_v3  ;;  %1616 = vlog2.f32 %v1109_v20 }
 0x61d   :  { %v1607_v0 = vpop.eup %1606  ;;  %v1152_v1 = vadd.f32 %v1121_v19, %v2040_v63 }
 0x61e   :  { %v1609_v2 = vpop.eup %1608  ;;  %v1171_v61 = vsub.f32 %v1968_v30, %v1155_v22  ;;  %v1123_v6 = vmul.f32 0.6931472, %v1607_v0  ;;  %v1111_v7 = vpop.xlane.xlu1 %1110 }
 0x61f   :  { %v1168_v8 = vsub.f32 %v1963_v29, %v1152_v1  ;;  %v1133_v27 = vmul.f32 0.6931472, %v1609_v2  ;;  %1618 = vlog2.f32 %v1111_v7  ;;  %v1105_v10 = vpop.xlane.xlu0 %1104 }
 0x620   :  { %1187 = vst [vmem:[#allocation11 + $0x18] sm:$0xff] %v1171_v61  ;;  %v1153_v12 = vadd.f32 %v1123_v6, %v2048_v5  ;;  %1620 = vlog2.f32 %v1105_v10 }
 0x621   :  { %v1611_v13 = vpop.eup %1610  ;;  %1184 = vst [vmem:[#allocation11] sm:$0xff] %v1168_v8  ;;  %v1158_v3 = vadd.f32 %v1133_v27, %v2052_v9 }
 0x622   :  { %v1613_v16 = vpop.eup %1612  ;;  %v1169_v63 = vsub.f32 %v1973_v32, %v1153_v12  ;;  %v1135_v23 = vmul.f32 0.6931472, %v1611_v13  ;;  %v1107_v30 = vpop.xlane.xlu1 %1106 }
 0x623   :  { %v1174_v25 = vsub.f32 %v1978_v38, %v1158_v3  ;;  %v1129_v26 = vmul.f32 0.6931472, %v1613_v16  ;;  %1622 = vlog2.f32 %v1107_v30  ;;  %v1113_v29 = vpop.xlane.xlu0 %1112 }
 0x624   :  { %1185 = vst [vmem:[#allocation11 + $0x8] sm:$0xff] %v1169_v63  ;;  %v1159_v28 = vadd.f32 %v1135_v23, %v2056_v11  ;;  %1624 = vlog2.f32 %v1113_v29 }
 0x625   :  { %v1615_v5 = vpop.eup %1614  ;;  %1190 = vst [vmem:[#allocation11 + $0x30] sm:$0xff] %v1174_v25  ;;  %v1156_v31 = vadd.f32 %v1129_v26, %v2060_v17 }
 0x626   :  { %v1617_v34 = vpop.eup %1616  ;;  %v1175_v9 = vsub.f32 %v1983_v41, %v1159_v28  ;;  %v1131_v35 = vmul.f32 0.6931472, %v1615_v5  ;;  %v1115_v32 = vpop.xlane.xlu1 %1114 }
 0x627   :  { %v1172_v37 = vsub.f32 %v1988_v43, %v1156_v31  ;;  %v1141_v39 = vmul.f32 0.6931472, %v1617_v34  ;;  %1626 = vlog2.f32 %v1115_v32  ;;  %v1117_v38 = vpop.xlane.xlu0 %1116 }
 0x628   :  { %1191 = vst [vmem:[#allocation11 + $0x38] sm:$0xff] %v1175_v9  ;;  %v1157_v40 = vadd.f32 %v1131_v35, %v2064_v24  ;;  %1628 = vlog2.f32 %v1117_v38 }
 0x629   :  { %v1619_v11 = vpop.eup %1618  ;;  %1188 = vst [vmem:[#allocation11 + $0x20] sm:$0xff] %v1172_v37  ;;  %v1162_v42 = vadd.f32 %v1141_v39, %v2068_v33 }
 0x62a   :  { %v1621_v45 = vpop.eup %1620  ;;  %v1173_v17 = vsub.f32 %v1993_v46, %v1157_v40  ;;  %v1143_v48 = vmul.f32 0.6931472, %v1619_v11  ;;  %v1119_v41 = vpop.xlane.xlu1 %1118 }
 0x62b   :  { %v1178_v49 = vsub.f32 %v1998_v50, %v1162_v42  ;;  %v1137_v51 = vmul.f32 0.6931472, %v1621_v45  ;;  %1630 = vlog2.f32 %v1119_v41 }
 0x62c   :  { %1189 = vst [vmem:[#allocation11 + $0x28] sm:$0xff] %v1173_v17  ;;  %v1163_v43 = vadd.f32 %v1143_v48, %v2072_v36 }
 0x62d   :  { %v1623_v52 = vpop.eup %1622  ;;  %1194 = vst [vmem:[#allocation11 + $0x50] sm:$0xff] %v1178_v49  ;;  %v1160_v24 = vadd.f32 %v1137_v51, %v2076_v44 }
 0x62e   :  { %v1625_v54 = vpop.eup %1624  ;;  %v1179_v14 = vsub.f32 %v2003_v53, %v1163_v43  ;;  %v1139_v33 = vmul.f32 0.6931472, %v1623_v52 }
 0x62f   :  { %v1176_v15 = vsub.f32 %v2008_v55, %v1160_v24  ;;  %v1145_v46 = vmul.f32 0.6931472, %v1625_v54 }
 0x630   :  { %1195 = vst [vmem:[#allocation11 + $0x58] sm:$0xff] %v1179_v14  ;;  %v1161_v19 = vadd.f32 %v1139_v33, %v2080_v47 }
 0x631   :  { %v1627_v50 = vpop.eup %1626  ;;  %1192 = vst [vmem:[#allocation11 + $0x40] sm:$0xff] %v1176_v15  ;;  %v1164_v20 = vadd.f32 %v1145_v46, %v2084_v56 }
 0x632   :  { %v1629_v22 = vpop.eup %1628  ;;  %v1177_v36 = vsub.f32 %v2013_v57, %v1161_v19  ;;  %v1147_v0 = vmul.f32 0.6931472, %v1627_v50 }
 0x633   :  { %v1180_v44 = vsub.f32 %v2018_v21, %v1164_v20  ;;  %v1149_v1 = vmul.f32 0.6931472, %v1629_v22 }
 0x634   :  { %1193 = vst [vmem:[#allocation11 + $0x48] sm:$0xff] %v1177_v36  ;;  %v1165_v53 = vadd.f32 %v1147_v0, %v2088_v18 }
 0x635   :  { %v1631_v2 = vpop.eup %1630  ;;  %1196 = vst [vmem:[#allocation11 + $0x60] sm:$0xff] %v1180_v44  ;;  %v1166_v55 = vadd.f32 %v1149_v1, %v2092_v62 }
 0x636   :  { %v1181_v47 = vsub.f32 %v2023_v58, %v1165_v53  ;;  %v1151_v61 = vmul.f32 0.6931472, %v1631_v2 }
 0x637   :  { %v1182_v6 = vsub.f32 %v2028_v59, %v1166_v55 }
 0x638   :  { %1197 = vst [vmem:[#allocation11 + $0x68] sm:$0xff] %v1181_v47  ;;  %v1167_v57 = vadd.f32 %v1151_v61, %v2096_v4 }
 0x639   :  { %1198 = vst [vmem:[#allocation11 + $0x70] sm:$0xff] %v1182_v6 }
 0x63a   :  { %v1183_v21 = vsub.f32 %v2033_v60, %v1167_v57 }
 0x63c   :  { %1199 = vst [vmem:[#allocation11 + $0x78] sm:$0xff] %v1183_v21 }
 0x63d   :  { %1753 = shalt.err (!%p1750_p2)
}
 0x63e   :  { %s1754_s26 = scalar_lea.hbm %s2152_s8, 2048 }
 0x63f   :  { %p1755_p3 = scmp.ne.s32.totalorder %s2152_s8, %s1754_s26  ;;  %p1758_p4 = scmp.lt.u32.totalorder %s1754_s26, %s2152_s8 }
 0x641   :  { %p1760_p5 = pnand %p1758_p4, %p1755_p3 }
 0x643   :  { %1763 = shalt.err (!%p1760_p5)
}
 0x644   :  { %s1780_s0 = smov 128   ;;  %s1781_s9 = smov 8  }
 0x645   :  { %1211 = dma.vmem_to_hbm [thread:$0]  %s1206_s22, 2048, %s2152_s8, [#allocation4], %s1780_s0, %s1780_s0, %s1781_s9  }
 0x646   :  { %1770 = dma.done.wait [#allocation4], 2048  }
 0x647   :  { %1771 = vsyncadd [#allocation4], 4294965248 }
 0x648   :  { %1215 = vsyncpa [#allocation3], 1 }
 0x649   :  { %1216 = vsyncpa [#allocation6], 1 }
 0x64a   :  { %1217 = vsyncpa [#allocation9], 1 }
 0x64b   :  { %1218 = vsyncpa [#allocation4], 1 }

</bundles_post_ra>
